<compile_context>
chip_gen: v7x
topology: tpu7x:2x2x1
jax: 0.10.0
libtpu: 0.0.40
codegen_flags: <defaults>
</compile_context>

<pallas_src>
import math
import functools

import jax
import jax.numpy as jnp
from jax import lax
from jax.experimental import pallas as pl
from jax.experimental.pallas import tpu as pltpu

LANE = 128  # TPU vreg lane width; pad all feature dims to a multiple of this.


def _round_up(n, m):
    return ((n + m - 1) // m) * m


def _pad_axis(a, target, axis):
    pad = target - a.shape[axis]
    if pad <= 0:
        return a
    widths = [(0, 0)] * a.ndim
    widths[axis] = (0, pad)
    return jnp.pad(a, widths)


def _make_fused_mlp_kernel(num_layers, batch_norm, use_bf16_matmul, eps=1e-5):
    """Fused MlpLayer forward.  Refs:
       x_ref:   [B, P]                 padded input (batch rows are exact, never padded)
       w_ref:   [L, P, P]              padded weights stored as [in, out]
       aff_ref: [L, 2, P] (BN: gamma, beta)  or  [L, 1, P] (no BN: bias)
       out_ref: [B, P]                 padded output of the last unit
    """

    def kernel(x_ref, w_ref, aff_ref, out_ref):
        h = x_ref[...]  # [B, P] f32, stays in vregs/VMEM across the unrolled layer loop
        for l in range(num_layers):  # static unroll (small L); use lax.fori_loop if L grows
            w = w_ref[l]  # [P, P]; padded rows/cols are zero, so padding is inert
            if use_bf16_matmul:
                z = jnp.dot(h.astype(jnp.bfloat16), w.astype(jnp.bfloat16),
                            preferred_element_type=jnp.float32)
            else:
                z = jnp.dot(h, w, preferred_element_type=jnp.float32)
            if batch_norm:
                # Linear bias omitted: constant-per-column shift is cancelled exactly by mean subtraction.
                gamma = aff_ref[l, 0:1, :]
                beta = aff_ref[l, 1:2, :]
                # BatchNorm1d training-mode batch stats (biased var), two-pass centered form.
                mean = jnp.mean(z, axis=0, keepdims=True)
                ctr = z - mean
                var = jnp.mean(ctr * ctr, axis=0, keepdims=True)
                scale = gamma * lax.rsqrt(var + eps)   # [1,P] row math; rsqrt on the EUP slot
                z = ctr * scale + beta                 # single full-[B,P] multiply per layer
            else:
                z = z + aff_ref[l, 0:1, :]             # bias only matters without BN
            h = jnp.maximum(z, 0.0)  # ReLU
        out_ref[...] = h

    return kernel


def prepare_mlp_params(params, batch_norm, use_bf16_matmul=False):
    """One-time packing: pad every layer to a common lane-dense width P and stack.
       Do this at init, NOT per forward call."""
    L = len(params)
    dims_in = [p["w"].shape[0] for p in params]
    dims_out = [p["w"].shape[1] for p in params]
    P = max(_round_up(d, LANE) for d in dims_in + dims_out)

    w_dtype = jnp.bfloat16 if use_bf16_matmul else jnp.float32
    w_all = jnp.stack(
        [_pad_axis(_pad_axis(p["w"], P, 0), P, 1) for p in params]
    ).astype(w_dtype)                                            # [L, P, P]

    rows = []
    for p in params:
        vecs = [p["gamma"], p["beta"]] if batch_norm else [p["b"]]
        rows.append(jnp.concatenate([_pad_axis(v, P, 1) for v in vecs], axis=0))
    aff_all = jnp.stack(rows).astype(jnp.float32)                # [L, 2 or 1, P]

    return {
        "w_all": w_all,
        "aff_all": aff_all,
        "num_layers": L,
        "in_dim": dims_in[0],
        "out_dim": dims_out[-1],
        "batch_norm": bool(batch_norm),
        "use_bf16_matmul": bool(use_bf16_matmul),
    }


@functools.partial(jax.jit,
                   static_argnames=("num_layers", "batch_norm", "out_dim", "use_bf16_matmul"))
def _mlp_forward_impl(x, w_all, aff_all, *, num_layers, batch_norm, out_dim, use_bf16_matmul):
    B = x.shape[0]
    P = w_all.shape[-1]
    x_pad = _pad_axis(x.astype(jnp.float32), P, axis=1)          # tiny pad, fused into this jit

    kernel = _make_fused_mlp_kernel(num_layers, batch_norm, use_bf16_matmul)
    vmem = pl.BlockSpec(memory_space=pltpu.MemorySpace.VMEM)
    out_pad = pl.pallas_call(
        kernel,
        out_shape=jax.ShapeDtypeStruct((B, P), jnp.float32),
        in_specs=[vmem, vmem, vmem],
        out_specs=vmem,
    )(x_pad, w_all, aff_all)
    # Slice lane-dense padded output back to the real last hidden width (inside the same jit).
    return out_pad[:, :out_dim]


def mlp_layer_forward(x, packed):
    """MlpLayer forward via one fused pallas_call, using pre-packed params from prepare_mlp_params()."""
    return _mlp_forward_impl(
        x, packed["w_all"], packed["aff_all"],
        num_layers=packed["num_layers"], batch_norm=packed["batch_norm"],
        out_dim=packed["out_dim"], use_bf16_matmul=packed["use_bf16_matmul"],
    )


def init_mlp_params(key, input_dim, hidden_units, batch_norm):
    """Deterministic init matching MlpUnitLayer._init_weight_:
       Linear.weight ~ xavier_normal_, bias = 0, BN gamma=1 beta=0."""
    params = []
    prev = input_dim
    for h in hidden_units:
        key, wk = jax.random.split(key)
        std = math.sqrt(2.0 / (prev + h))  # xavier_normal for torch weight of shape [out, in]
        w_torch = std * jax.random.normal(wk, (h, prev), dtype=jnp.float32)  # [out, in]
        layer = {
            "w": jnp.transpose(w_torch),                  # store as [in, out] for X @ W
            "b": jnp.zeros((1, h), dtype=jnp.float32),
        }
        if batch_norm:
            layer["gamma"] = jnp.ones((1, h), dtype=jnp.float32)
            layer["beta"] = jnp.zeros((1, h), dtype=jnp.float32)
        params.append(layer)
        prev = h
    return params


def _reference_forward(x, params, batch_norm):
    """Pure-JAX reference (unpadded, includes the bias even under BN — it cancels)."""
    h = x
    for layer in params:
        z = h @ layer["w"] + layer["b"]
        if batch_norm:
            m = jnp.mean(z, axis=0, keepdims=True)
            v = jnp.mean((z - m) ** 2, axis=0, keepdims=True)
            z = (z - m) / jnp.sqrt(v + 1e-5) * layer["gamma"] + layer["beta"]
        h = jnp.maximum(z, 0.0)
    return h


if __name__ == "__main__":
    # TODO(synk): Dropout (dropout_rates > 0) not implemented; the module is used with dropout_rates=0.0
    #             so the Dropout layer is absent.
    # TODO(synk): BatchNorm1d running_mean/running_var updates (training-mode side effect) are not
    #             materialized; only the batch-statistics normalization of the forward pass is computed.
    key = jax.random.PRNGKey(0)
    batch = 8            # must be the exact batch (BN stats divide by kernel-visible rows)
    input_dim = 32
    hidden_units = [64, 32, 16]

    key, xk, pk = jax.random.split(key, 3)
    x = jax.random.normal(xk, (batch, input_dim), dtype=jnp.float32)

    # --- BN path ---
    params_bn = init_mlp_params(pk, input_dim, hidden_units, batch_norm=True)
    packed_bn = prepare_mlp_params(params_bn, batch_norm=True)   # one-time padding/stacking
    out_bn = jax.block_until_ready(mlp_layer_forward(x, packed_bn))
    ref_bn = _reference_forward(x, params_bn, batch_norm=True)
    assert out_bn.shape == (batch, hidden_units[-1])
    assert jnp.allclose(out_bn, ref_bn, atol=1e-4, rtol=1e-4)

    # --- no-BN path (exercises the bias branch) ---
    params_nb = init_mlp_params(pk, input_dim, hidden_units, batch_norm=False)
    packed_nb = prepare_mlp_params(params_nb, batch_norm=False)
    out_nb = jax.block_until_ready(mlp_layer_forward(x, packed_nb))
    ref_nb = _reference_forward(x, params_nb, batch_norm=False)
    assert out_nb.shape == (batch, hidden_units[-1])
    assert jnp.allclose(out_nb, ref_nb, atol=1e-4, rtol=1e-4)

    print("KERNEL_OK")
</pallas_src>

<mosaic_0001>
module attributes {stable_mosaic.version = 11 : i64} {
  func.func @kernel(%arg0: memref<8x128xf32, #tpu.memory_space<vmem>>, %arg1: memref<3x128x128xf32, #tpu.memory_space<vmem>>, %arg2: memref<3x2x128xf32, #tpu.memory_space<vmem>>, %arg3: memref<8x128xf32, #tpu.memory_space<vmem>>) attributes {dimension_semantics = [], scalar_prefetch = 0 : i64, scratch_operands = 0 : i64, tpu.core_type = #tpu.core_type<tc>} {
    %c0 = arith.constant 0 : index
    %c0_0 = arith.constant 0 : index
    %0 = vector.load %arg0[%c0, %c0_0] : memref<8x128xf32, #tpu.memory_space<vmem>>, vector<8x128xf32>
    %c0_1 = arith.constant 0 : index
    %c0_2 = arith.constant 0 : index
    %c0_3 = arith.constant 0 : index
    %1 = vector.load %arg1[%c0_1, %c0_2, %c0_3] : memref<3x128x128xf32, #tpu.memory_space<vmem>>, vector<1x128x128xf32>
    %2 = vector.shape_cast %1 : vector<1x128x128xf32> to vector<128x128xf32>
    %cst = arith.constant dense<0.000000e+00> : vector<8x128xf32>
    %3 = tpu.matmul %0, %2, %cst {dimension_numbers = #tpu.dot_dimension_numbers<[1], [0], [0], [1], [0, 0, 1, 1], [], []>} : vector<8x128xf32>, vector<128x128xf32>, vector<8x128xf32> -> vector<8x128xf32>
    %c0_4 = arith.constant 0 : index
    %c0_5 = arith.constant 0 : index
    %c0_6 = arith.constant 0 : index
    %4 = vector.load %arg2[%c0_4, %c0_5, %c0_6] : memref<3x2x128xf32, #tpu.memory_space<vmem>>, vector<1x1x128xf32>
    %5 = vector.shape_cast %4 : vector<1x1x128xf32> to vector<1x128xf32>
    %c0_7 = arith.constant 0 : index
    %c1 = arith.constant 1 : index
    %c0_8 = arith.constant 0 : index
    %6 = vector.load %arg2[%c0_7, %c1, %c0_8] : memref<3x2x128xf32, #tpu.memory_space<vmem>>, vector<1x1x128xf32>
    %7 = vector.shape_cast %6 : vector<1x1x128xf32> to vector<1x128xf32>
    %cst_9 = arith.constant dense<0.000000e+00> : vector<128xf32>
    %8 = vector.multi_reduction <add>, %3, %cst_9 [0] : vector<8x128xf32> to vector<128xf32>
    %9 = vector.shape_cast %8 : vector<128xf32> to vector<1x128xf32>
    %cst_10 = arith.constant 8.000000e+00 : f32
    %10 = vector.broadcast %cst_10 : f32 to vector<1x128xf32>
    %11 = arith.divf %9, %10 : vector<1x128xf32>
    %12 = vector.broadcast %11 : vector<1x128xf32> to vector<8x128xf32>
    %13 = arith.subf %3, %12 : vector<8x128xf32>
    %14 = arith.mulf %13, %13 : vector<8x128xf32>
    %cst_11 = arith.constant dense<0.000000e+00> : vector<128xf32>
    %15 = vector.multi_reduction <add>, %14, %cst_11 [0] : vector<8x128xf32> to vector<128xf32>
    %16 = vector.shape_cast %15 : vector<128xf32> to vector<1x128xf32>
    %cst_12 = arith.constant 8.000000e+00 : f32
    %17 = vector.broadcast %cst_12 : f32 to vector<1x128xf32>
    %18 = arith.divf %16, %17 : vector<1x128xf32>
    %cst_13 = arith.constant 9.99999974E-6 : f32
    %19 = vector.broadcast %cst_13 : f32 to vector<1x128xf32>
    %20 = arith.addf %18, %19 : vector<1x128xf32>
    %21 = math.rsqrt %20 : vector<1x128xf32>
    %22 = arith.mulf %5, %21 : vector<1x128xf32>
    %23 = vector.broadcast %22 : vector<1x128xf32> to vector<8x128xf32>
    %24 = arith.mulf %13, %23 : vector<8x128xf32>
    %25 = vector.broadcast %7 : vector<1x128xf32> to vector<8x128xf32>
    %26 = arith.addf %24, %25 : vector<8x128xf32>
    %cst_14 = arith.constant 0.000000e+00 : f32
    %27 = vector.broadcast %cst_14 : f32 to vector<8x128xf32>
    %28 = arith.maximumf %26, %27 : vector<8x128xf32>
    %c1_15 = arith.constant 1 : index
    %c0_16 = arith.constant 0 : index
    %c0_17 = arith.constant 0 : index
    %29 = vector.load %arg1[%c1_15, %c0_16, %c0_17] : memref<3x128x128xf32, #tpu.memory_space<vmem>>, vector<1x128x128xf32>
    %30 = vector.shape_cast %29 : vector<1x128x128xf32> to vector<128x128xf32>
    %cst_18 = arith.constant dense<0.000000e+00> : vector<8x128xf32>
    %31 = tpu.matmul %28, %30, %cst_18 {dimension_numbers = #tpu.dot_dimension_numbers<[1], [0], [0], [1], [0, 0, 1, 1], [], []>} : vector<8x128xf32>, vector<128x128xf32>, vector<8x128xf32> -> vector<8x128xf32>
    %c1_19 = arith.constant 1 : index
    %c0_20 = arith.constant 0 : index
    %c0_21 = arith.constant 0 : index
    %32 = vector.load %arg2[%c1_19, %c0_20, %c0_21] : memref<3x2x128xf32, #tpu.memory_space<vmem>>, vector<1x1x128xf32>
    %33 = vector.shape_cast %32 : vector<1x1x128xf32> to vector<1x128xf32>
    %c1_22 = arith.constant 1 : index
    %c1_23 = arith.constant 1 : index
    %c0_24 = arith.constant 0 : index
    %34 = vector.load %arg2[%c1_22, %c1_23, %c0_24] : memref<3x2x128xf32, #tpu.memory_space<vmem>>, vector<1x1x128xf32>
    %35 = vector.shape_cast %34 : vector<1x1x128xf32> to vector<1x128xf32>
    %cst_25 = arith.constant dense<0.000000e+00> : vector<128xf32>
    %36 = vector.multi_reduction <add>, %31, %cst_25 [0] : vector<8x128xf32> to vector<128xf32>
    %37 = vector.shape_cast %36 : vector<128xf32> to vector<1x128xf32>
    %cst_26 = arith.constant 8.000000e+00 : f32
    %38 = vector.broadcast %cst_26 : f32 to vector<1x128xf32>
    %39 = arith.divf %37, %38 : vector<1x128xf32>
    %40 = vector.broadcast %39 : vector<1x128xf32> to vector<8x128xf32>
    %41 = arith.subf %31, %40 : vector<8x128xf32>
    %42 = arith.mulf %41, %41 : vector<8x128xf32>
    %cst_27 = arith.constant dense<0.000000e+00> : vector<128xf32>
    %43 = vector.multi_reduction <add>, %42, %cst_27 [0] : vector<8x128xf32> to vector<128xf32>
    %44 = vector.shape_cast %43 : vector<128xf32> to vector<1x128xf32>
    %cst_28 = arith.constant 8.000000e+00 : f32
    %45 = vector.broadcast %cst_28 : f32 to vector<1x128xf32>
    %46 = arith.divf %44, %45 : vector<1x128xf32>
    %cst_29 = arith.constant 9.99999974E-6 : f32
    %47 = vector.broadcast %cst_29 : f32 to vector<1x128xf32>
    %48 = arith.addf %46, %47 : vector<1x128xf32>
    %49 = math.rsqrt %48 : vector<1x128xf32>
    %50 = arith.mulf %33, %49 : vector<1x128xf32>
    %51 = vector.broadcast %50 : vector<1x128xf32> to vector<8x128xf32>
    %52 = arith.mulf %41, %51 : vector<8x128xf32>
    %53 = vector.broadcast %35 : vector<1x128xf32> to vector<8x128xf32>
    %54 = arith.addf %52, %53 : vector<8x128xf32>
    %cst_30 = arith.constant 0.000000e+00 : f32
    %55 = vector.broadcast %cst_30 : f32 to vector<8x128xf32>
    %56 = arith.maximumf %54, %55 : vector<8x128xf32>
    %c2 = arith.constant 2 : index
    %c0_31 = arith.constant 0 : index
    %c0_32 = arith.constant 0 : index
    %57 = vector.load %arg1[%c2, %c0_31, %c0_32] : memref<3x128x128xf32, #tpu.memory_space<vmem>>, vector<1x128x128xf32>
    %58 = vector.shape_cast %57 : vector<1x128x128xf32> to vector<128x128xf32>
    %cst_33 = arith.constant dense<0.000000e+00> : vector<8x128xf32>
    %59 = tpu.matmul %56, %58, %cst_33 {dimension_numbers = #tpu.dot_dimension_numbers<[1], [0], [0], [1], [0, 0, 1, 1], [], []>} : vector<8x128xf32>, vector<128x128xf32>, vector<8x128xf32> -> vector<8x128xf32>
    %c2_34 = arith.constant 2 : index
    %c0_35 = arith.constant 0 : index
    %c0_36 = arith.constant 0 : index
    %60 = vector.load %arg2[%c2_34, %c0_35, %c0_36] : memref<3x2x128xf32, #tpu.memory_space<vmem>>, vector<1x1x128xf32>
    %61 = vector.shape_cast %60 : vector<1x1x128xf32> to vector<1x128xf32>
    %c2_37 = arith.constant 2 : index
    %c1_38 = arith.constant 1 : index
    %c0_39 = arith.constant 0 : index
    %62 = vector.load %arg2[%c2_37, %c1_38, %c0_39] : memref<3x2x128xf32, #tpu.memory_space<vmem>>, vector<1x1x128xf32>
    %63 = vector.shape_cast %62 : vector<1x1x128xf32> to vector<1x128xf32>
    %cst_40 = arith.constant dense<0.000000e+00> : vector<128xf32>
    %64 = vector.multi_reduction <add>, %59, %cst_40 [0] : vector<8x128xf32> to vector<128xf32>
    %65 = vector.shape_cast %64 : vector<128xf32> to vector<1x128xf32>
    %cst_41 = arith.constant 8.000000e+00 : f32
    %66 = vector.broadcast %cst_41 : f32 to vector<1x128xf32>
    %67 = arith.divf %65, %66 : vector<1x128xf32>
    %68 = vector.broadcast %67 : vector<1x128xf32> to vector<8x128xf32>
    %69 = arith.subf %59, %68 : vector<8x128xf32>
    %70 = arith.mulf %69, %69 : vector<8x128xf32>
    %cst_42 = arith.constant dense<0.000000e+00> : vector<128xf32>
    %71 = vector.multi_reduction <add>, %70, %cst_42 [0] : vector<8x128xf32> to vector<128xf32>
    %72 = vector.shape_cast %71 : vector<128xf32> to vector<1x128xf32>
    %cst_43 = arith.constant 8.000000e+00 : f32
    %73 = vector.broadcast %cst_43 : f32 to vector<1x128xf32>
    %74 = arith.divf %72, %73 : vector<1x128xf32>
    %cst_44 = arith.constant 9.99999974E-6 : f32
    %75 = vector.broadcast %cst_44 : f32 to vector<1x128xf32>
    %76 = arith.addf %74, %75 : vector<1x128xf32>
    %77 = math.rsqrt %76 : vector<1x128xf32>
    %78 = arith.mulf %61, %77 : vector<1x128xf32>
    %79 = vector.broadcast %78 : vector<1x128xf32> to vector<8x128xf32>
    %80 = arith.mulf %69, %79 : vector<8x128xf32>
    %81 = vector.broadcast %63 : vector<1x128xf32> to vector<8x128xf32>
    %82 = arith.addf %80, %81 : vector<8x128xf32>
    %cst_45 = arith.constant 0.000000e+00 : f32
    %83 = vector.broadcast %cst_45 : f32 to vector<8x128xf32>
    %84 = arith.maximumf %82, %83 : vector<8x128xf32>
    %c0_46 = arith.constant 0 : index
    %c0_47 = arith.constant 0 : index
    %85 = vector.load %arg3[%c0_46, %c0_47] : memref<8x128xf32, #tpu.memory_space<vmem>>, vector<8x128xf32>
    tpu.vector_store %arg3[%c0_46, %c0_47], %84 {strides = array<i32>} : memref<8x128xf32, #tpu.memory_space<vmem>>, vector<8x128xf32>,
    return
  }
}

</mosaic_0001>

<bundles_post_ra>
// kernel: _mlp_forward_impl.1
= control target key start
LH: loop header
LB: loop body
LE: loop exit
PB: predicated region body
PF: predicated region fallthrough
CT: control target
= control target key end

     0   :  { %8 = vsyncpa [#allocation3], 0  ;;  %s805_s0 = inlined_call_operand.vmem [shape: f32[8,128], index: 0, kind: input, shape index: {}]   ;;  %s806_s1 = inlined_call_operand.hbm [shape: f32[3,128,128], index: 1, kind: input, shape index: {}]   ;;  %s807_s2 = inlined_call_operand.vmem [shape: f32[3,2,128], index: 2, kind: input, shape index: {}]   ;;  %s808_s3 = inlined_call_operand.hbm [shape: f32[8,128], index: 3, kind: output, shape index: {}]  }
   0x1   :  { %9 = vsyncpa [#allocation4], 0  ;;  %s701_s12 = smov [#allocation2]   ;;  %s653_s16 = scalar_lea.hbm %s806_s1, 6144 }
   0x2   :  { %s17_s13 = sshll.u32 %s701_s12, 4  ;;  %p654_p0 = scmp.ne.s32.totalorder %s806_s1, %s653_s16  ;;  %s18_s13 = int_to_ptr.vmem [resolvable:$true] %s17_s13 }
   0x3   :  { %p657_p1 = scmp.lt.u32.totalorder %s653_s16, %s806_s1 }
   0x5   :  { %p659_p2 = pnand %p657_p1, %p654_p0 }
   0x7   :  { %662 = shalt.err (!%p659_p2)
}
   0x8   :  { %s663_s21 = scalar_lea.vmem %s18_s13, 6144  ;;  %p668_p4 = scmp.lt.s32.totalorder %s18_s13, %s18_s13 }
   0x9   :  { %p664_p3 = scmp.ne.s32.totalorder %s18_s13, %s663_s21  ;;  %p669_p5 = scmp.lt.s32.totalorder %s663_s21, %s663_s21 }
   0xb   :  { %p670_p6 = por %p669_p5, %p668_p4 }
   0xd   :  { %p671_p7 = pnand %p670_p6, %p664_p3 }
   0xf   :  { %674 = shalt.err (!%p671_p7)
}
  0x10   :  { %s702_s22 = smov 128   ;;  %s703_s23 = smov 8  }
  0x11   :  { %23 = dma.hbm_to_vmem [thread:$0]  %s806_s1, 6144, %s18_s13, [#allocation3], %s702_s22, %s702_s22, %s703_s23  }
  0x12   :  { %697 = dma.done.wait [#allocation3], 6144  }
  0x13   :  { %698 = vsyncadd [#allocation3], 4294961152  ;;  %v704_v0 = vmov 0.0|0.0   ;;  %vm705_vm0 = vmmov 0   ;;  %v706_v1 = vmov 0.0   ;;  %v30_v2 = vld [vmem:[#allocation2] sm:$0xff] }
  0x14   :  { %568 = vmatprep.subr.bf16.mxu0 %v704_v0  ;;  %495 = vmatprep.mubr.msk.f32.mxu0 %vm705_vm0, %v706_v1  ;;  %v31_v3 = vld [vmem:[#allocation2 + $0x8] sm:$0xff]  ;;  %v32_v4 = vld [vmem:[#allocation2 + $0x10] sm:$0xff]  ;;  %v33_v6 = vld [vmem:[#allocation2 + $0x18] sm:$0xff]  ;;  %s707_s11 = smov [#allocation5]  }
  0x15   :  { %592 = vmatprep.subr.bf16.mxu1 %v704_v0  ;;  %530 = vmatprep.mubr.msk.f32.mxu1 %vm705_vm0, %v706_v1  ;;  %v569_v5 = vpack.c.bf16 %v31_v3, %v30_v2  ;;  %v572_v7 = vpack.c.bf16 %v33_v6, %v32_v4  ;;  %v34_v8 = vld [vmem:[#allocation2 + $0x20] sm:$0xff]  ;;  %v35_v9 = vld [vmem:[#allocation2 + $0x28] sm:$0xff]  ;;  %v36_v11 = vld [vmem:[#allocation2 + $0x30] sm:$0xff]  ;;  %s396_s12 = sshll.u32 %s707_s11, 4  ;;  %s397_s12 = int_to_ptr.vmem [resolvable:$true] %s396_s12 }
  0x16   :  { %v575_v10 = vpack.c.bf16 %v35_v9, %v34_v8  ;;  %v37_v12 = vld [vmem:[#allocation2 + $0x38] sm:$0xff]  ;;  %v38_v14 = vld [vmem:[#allocation2 + $0x40] sm:$0xff]  ;;  %v39_v15 = vld [vmem:[#allocation2 + $0x48] sm:$0xff]  ;;  %s675_s13 = scalar_lea.vmem %s397_s12, 128  ;;  %p680_p9 = scmp.lt.s32.totalorder %s397_s12, %s397_s12 }
  0x17   :  { %570 = vmatpush3.bf16.msra.mxu0 %v569_v5  ;;  %v578_v13 = vpack.c.bf16 %v37_v12, %v36_v11  ;;  %v581_v16 = vpack.c.bf16 %v39_v15, %v38_v14  ;;  %v40_v17 = vld [vmem:[#allocation2 + $0x50] sm:$0xff]  ;;  %v41_v18 = vld [vmem:[#allocation2 + $0x58] sm:$0xff]  ;;  %v42_v20 = vld [vmem:[#allocation2 + $0x60] sm:$0xff]  ;;  %p676_p8 = scmp.ne.s32.totalorder %s397_s12, %s675_s13  ;;  %p681_p10 = scmp.lt.s32.totalorder %s675_s13, %s675_s13 }
  0x18   :  { %571 = vmatprep.subr.bf16.mxu0 %v704_v0  ;;  %v584_v19 = vpack.c.bf16 %v41_v18, %v40_v17  ;;  %v43_v21 = vld [vmem:[#allocation2 + $0x68] sm:$0xff]  ;;  %v44_v23 = vld [vmem:[#allocation2 + $0x70] sm:$0xff]  ;;  %v45_v24 = vld [vmem:[#allocation2 + $0x78] sm:$0xff] }
  0x19   :  { %v587_v22 = vpack.c.bf16 %v43_v21, %v42_v20  ;;  %v590_v25 = vpack.c.bf16 %v45_v24, %v44_v23  ;;  %v29_v26 = vld [vmem:[%s805_s0] sm:$0xff]  ;;  %v150_v27 = vld [vmem:[#allocation2 + $0x80] sm:$0xff]  ;;  %v151_v28 = vld [vmem:[#allocation2 + $0x88] sm:$0xff]  ;;  %p682_p11 = por %p681_p10, %p680_p9 }
  0x1a   :  { %v593_v29 = vpack.c.bf16 %v151_v28, %v150_v27  ;;  %v152_v30 = vld [vmem:[#allocation2 + $0x90] sm:$0xff]  ;;  %v153_v31 = vld [vmem:[#allocation2 + $0x98] sm:$0xff]  ;;  %v154_v33 = vld [vmem:[#allocation2 + $0xa0] sm:$0xff] }
  0x1b   :  { %573 = vmatpush3.bf16.msra.mxu0 %v572_v7  ;;  %v596_v32 = vpack.c.bf16 %v153_v31, %v152_v30  ;;  %v155_v34 = vld [vmem:[#allocation2 + $0xa8] sm:$0xff]  ;;  %v156_v36 = vld [vmem:[#allocation2 + $0xb0] sm:$0xff]  ;;  %v157_v37 = vld [vmem:[#allocation2 + $0xb8] sm:$0xff]  ;;  %v138_v7 = vlaneseq  ;;  %p683_p12 = pnand %p682_p11, %p676_p8 }
  0x1c   :  { %574 = vmatprep.subr.bf16.mxu0 %v704_v0  ;;  %594 = vmatpush3.bf16.msra.mxu1 %v593_v29  ;;  %v599_v35 = vpack.c.bf16 %v155_v34, %v154_v33  ;;  %v602_v38 = vpack.c.bf16 %v157_v37, %v156_v36  ;;  %v158_v39 = vld [vmem:[#allocation2 + $0xc0] sm:$0xff]  ;;  %v159_v40 = vld [vmem:[#allocation2 + $0xc8] sm:$0xff]  ;;  %v160_v42 = vld [vmem:[#allocation2 + $0xd0] sm:$0xff] }
  0x1d   :  { %595 = vmatprep.subr.bf16.mxu1 %v704_v0  ;;  %v605_v41 = vpack.c.bf16 %v159_v40, %v158_v39  ;;  %v161_v43 = vld [vmem:[#allocation2 + $0xd8] sm:$0xff]  ;;  %v162_v45 = vld [vmem:[#allocation2 + $0xe0] sm:$0xff]  ;;  %v163_v46 = vld [vmem:[#allocation2 + $0xe8] sm:$0xff]  ;;  %v139_v8 = vshrl.u32 %v138_v7, 7 }
  0x1e   :  { %v608_v44 = vpack.c.bf16 %v161_v43, %v160_v42  ;;  %v611_v47 = vpack.c.bf16 %v163_v46, %v162_v45  ;;  %v164_v48 = vld [vmem:[#allocation2 + $0xf0] sm:$0xff]  ;;  %v165_v49 = vld [vmem:[#allocation2 + $0xf8] sm:$0xff]  ;;  %v270_v18 = vld [vmem:[#allocation2 + $0x100] sm:$0xff] }
  0x1f   :  { %576 = vmatpush3.bf16.msra.mxu0 %v575_v10  ;;  %v614_v50 = vpack.c.bf16 %v165_v49, %v164_v48  ;;  %v116_v9 = vld [vmem:[%s807_s2] sm:$0x1]  ;;  %v766_v10 = vsub.s32 0, %v139_v8  ;;  %v405_v14 = vld [vmem:[%s807_s2 + $0x1] ss:$0 sm:$0xff]  ;;  %v272_v21 = vld [vmem:[#allocation2 + $0x110] sm:$0xff] }
  0x20   :  { %577 = vmatprep.subr.bf16.mxu0 %v704_v0  ;;  %597 = vmatpush3.bf16.msra.mxu1 %v596_v32  ;;  %v274_v24 = vld [vmem:[#allocation2 + $0x120] sm:$0xff]  ;;  %v276_v27 = vld [vmem:[#allocation2 + $0x130] sm:$0xff]  ;;  %v277_v28 = vld [vmem:[#allocation2 + $0x138] sm:$0xff] }
  0x21   :  { %598 = vmatprep.subr.bf16.mxu1 %v704_v0  ;;  %v626_v29 = vpack.c.bf16 %v277_v28, %v276_v27  ;;  %v278_v30 = vld [vmem:[#allocation2 + $0x140] sm:$0xff]  ;;  %v279_v31 = vld [vmem:[#allocation2 + $0x148] sm:$0xff]  ;;  %v280_v33 = vld [vmem:[#allocation2 + $0x150] sm:$0xff] }
  0x22   :  { %v629_v32 = vpack.c.bf16 %v279_v31, %v278_v30  ;;  %v281_v34 = vld [vmem:[#allocation2 + $0x158] sm:$0xff]  ;;  %v282_v36 = vld [vmem:[#allocation2 + $0x160] sm:$0xff]  ;;  %v283_v37 = vld [vmem:[#allocation2 + $0x168] sm:$0xff] }
  0x23   :  { %579 = vmatpush3.bf16.msra.mxu0 %v578_v13  ;;  %v284_v39 = vld [vmem:[#allocation2 + $0x170] sm:$0xff]  ;;  %v285_v40 = vld [vmem:[#allocation2 + $0x178] sm:$0xff] }
  0x24   :  { %580 = vmatprep.subr.bf16.mxu0 %v704_v0  ;;  %600 = vmatpush3.bf16.msra.mxu1 %v599_v35  ;;  %v632_v35 = vpack.c.bf16 %v281_v34, %v280_v33 }
  0x25   :  { %601 = vmatprep.subr.bf16.mxu1 %v704_v0 }
  0x27   :  { %582 = vmatpush3.bf16.msra.mxu0 %v581_v16 }
  0x28   :  { %583 = vmatprep.subr.bf16.mxu0 %v704_v0  ;;  %603 = vmatpush3.bf16.msra.mxu1 %v602_v38  ;;  %v635_v38 = vpack.c.bf16 %v283_v37, %v282_v36 }
  0x29   :  { %604 = vmatprep.subr.bf16.mxu1 %v704_v0 }
  0x2b   :  { %585 = vmatpush3.bf16.msra.mxu0 %v584_v19  ;;  %v271_v19 = vld [vmem:[#allocation2 + $0x108] sm:$0xff] }
  0x2c   :  { %586 = vmatprep.subr.bf16.mxu0 %v704_v0  ;;  %606 = vmatpush3.bf16.msra.mxu1 %v605_v41  ;;  %v617_v20 = vpack.c.bf16 %v271_v19, %v270_v18  ;;  %v638_v41 = vpack.c.bf16 %v285_v40, %v284_v39 }
  0x2d   :  { %607 = vmatprep.subr.bf16.mxu1 %v704_v0 }
  0x2f   :  { %588 = vmatpush3.bf16.msra.mxu0 %v587_v22  ;;  %v273_v22 = vld [vmem:[#allocation2 + $0x118] sm:$0xff] }
  0x30   :  { %589 = vmatprep.subr.bf16.mxu0 %v704_v0  ;;  %609 = vmatpush3.bf16.msra.mxu1 %v608_v44  ;;  %v620_v23 = vpack.c.bf16 %v273_v22, %v272_v21 }
  0x31   :  { %610 = vmatprep.subr.bf16.mxu1 %v704_v0 }
  0x33   :  { %591 = vmatpush3.bf16.msra.mxu0 %v590_v25  ;;  %v275_v25 = vld [vmem:[#allocation2 + $0x128] sm:$0xff] }
  0x34   :  { %616 = vmatprep.subr.bf16.mxu0 %v704_v0  ;;  %612 = vmatpush3.bf16.msra.mxu1 %v611_v47 }
  0x35   :  { %613 = vmatprep.subr.bf16.mxu1 %v704_v0 }
  0x36   :  { %496 = vmatmul.mubr.f32.vlgmr.msra.gmra.mrb[0].mxu0 %v29_v26  ;;  %v623_v26 = vpack.c.bf16 %v275_v25, %v274_v24  ;;  %v409_v25 = vld [vmem:[%s807_s2 + $0x4] sm:$0x1] }
  0x37   :  { %565 = vmatprep.mubr.msk.f32.mxu0 %vm705_vm0, %v706_v1  ;;  %618 = vmatpush3.bf16.msra.mxu0 %v617_v20 }
  0x38   :  { %615 = vmatpush3.bf16.msra.mxu1 %v614_v50  ;;  %619 = vmatprep.subr.bf16.mxu0 %v704_v0 }
  0x3b   :  { %621 = vmatpush3.bf16.msra.mxu0 %v620_v23 }
  0x3c   :  { %622 = vmatprep.subr.bf16.mxu0 %v704_v0 }
  0x3f   :  { %624 = vmatpush3.bf16.msra.mxu0 %v623_v26 }
  0x40   :  { %625 = vmatprep.subr.bf16.mxu0 %v704_v0 }
  0x43   :  { %627 = vmatpush3.bf16.msra.mxu0 %v626_v29  ;;  %v411_v29 = vld [vmem:[%s807_s2 + $0x5] ss:$0 sm:$0xff] }
  0x44   :  { %628 = vmatprep.subr.bf16.mxu0 %v704_v0 }
  0x47   :  { %630 = vmatpush3.bf16.msra.mxu0 %v629_v32 }
  0x48   :  { %631 = vmatprep.subr.bf16.mxu0 %v704_v0 }
  0x4b   :  { %633 = vmatpush3.bf16.msra.mxu0 %v632_v35 }
  0x4c   :  { %634 = vmatprep.subr.bf16.mxu0 %v704_v0 }
  0x4f   :  { %636 = vmatpush3.bf16.msra.mxu0 %v635_v38 }
  0x50   :  { %637 = vmatprep.subr.bf16.mxu0 %v704_v0 }
  0x53   :  { %639 = vmatpush3.bf16.msra.mxu0 %v638_v41 }
 0x109   :  { %v112_v51 = vpop.f32.mrb[0].mxu0 }
 0x10a   :  { %v118_v52 = vrot.slane %v112_v51, 4  ;;  %v497_v53 = vpop.f32.mrb[1].mxu0 }
 0x10c   :  { %v119_v54 = vadd.f32 %v118_v52, %v112_v51 }
 0x10e   :  { %v120_v55 = vrot.slane %v119_v54, 2 }
 0x110   :  { %v121_v56 = vadd.f32 %v120_v55, %v119_v54 }
 0x112   :  { %v122_v57 = vrot.slane %v121_v56, 1 }
 0x114   :  { %v123_v58 = vadd.f32 %v122_v57, %v121_v56 }
 0x116   :  { %v125_v59 = vmul.f32 0.125, %v123_v58 }
 0x118   :  { %v126_v60 = vsub.f32 %v112_v51, %v125_v59 }
 0x11a   :  { %v127_v61 = vmul.f32 %v126_v60, %v126_v60 }
 0x11c   :  { %v128_v62 = vrot.slane %v127_v61, 4 }
 0x11e   :  { %v129_v63 = vadd.f32 %v128_v62, %v127_v61 }
 0x120   :  { %v130_v1 = vrot.slane %v129_v63, 2 }
 0x122   :  { %v131_v2 = vadd.f32 %v130_v1, %v129_v63  ;;  %v408_v1 = vld [vmem:[%s807_s2 + $0x3] ss:$0 sm:$0xff] }
 0x124   :  { %v132_v3 = vrot.slane %v131_v2, 1 }
 0x126   :  { %v133_v4 = vadd.f32 %v132_v3, %v131_v2 }
 0x128   :  { %v134_v5 = vmul.f32 0.125, %v133_v4 }
 0x12a   :  { %v135_v6 = vadd.f32 1e-05, %v134_v5 }
 0x12c   :  { %647 = vrsqrt.f32 %v135_v6 }
 0x136   :  { %v648_v11 = vpop.eup %647 }
 0x137   :  { %v137_v12 = vmul.f32 %v648_v11, %v116_v9 }
 0x139   :  { %v141_v13 = vrot.slane %v137_v12, %v766_v10 }
 0x13b   :  { %v142_v15 = vmul.f32 %v141_v13, %v126_v60  ;;  %v406_v60 = vld [vmem:[%s807_s2 + $0x2] sm:$0x1] }
 0x13d   :  { %v147_v16 = vadd.f32 %v405_v14, %v142_v15 }
 0x13f   :  { %v148_v17 = vmax.f32 %v147_v16, 0.0 }
 0x141   :  { %531 = vmatmul.mubr.f32.vlgmr.msra.gmra.mrb[0].mxu1 %v148_v17 }
 0x214   :  { %v232_v42 = vpop.f32.mrb[0].mxu1 }
 0x215   :  { %v239_v43 = vrot.slane %v232_v42, 4  ;;  %v532_v44 = vpop.f32.mrb[1].mxu1 }
 0x217   :  { %v240_v45 = vadd.f32 %v239_v43, %v232_v42 }
 0x219   :  { %v241_v46 = vrot.slane %v240_v45, 2 }
 0x21b   :  { %v242_v47 = vadd.f32 %v241_v46, %v240_v45 }
 0x21d   :  { %v243_v48 = vrot.slane %v242_v47, 1 }
 0x21f   :  { %v244_v49 = vadd.f32 %v243_v48, %v242_v47 }
 0x221   :  { %v245_v50 = vmul.f32 0.125, %v244_v49 }
 0x223   :  { %v246_v51 = vsub.f32 %v232_v42, %v245_v50 }
 0x225   :  { %v247_v52 = vmul.f32 %v246_v51, %v246_v51 }
 0x227   :  { %v248_v53 = vrot.slane %v247_v52, 4 }
 0x229   :  { %v249_v54 = vadd.f32 %v248_v53, %v247_v52 }
 0x22b   :  { %v250_v55 = vrot.slane %v249_v54, 2 }
 0x22d   :  { %v251_v56 = vadd.f32 %v250_v55, %v249_v54 }
 0x22f   :  { %v252_v0 = vrot.slane %v251_v56, 1 }
 0x231   :  { %v253_v57 = vadd.f32 %v252_v0, %v251_v56 }
 0x233   :  { %v254_v58 = vmul.f32 0.125, %v253_v57 }
 0x235   :  { %v255_v59 = vadd.f32 1e-05, %v254_v58 }
 0x237   :  { %649 = vrsqrt.f32 %v255_v59 }
 0x241   :  { %v650_v61 = vpop.eup %649 }
 0x242   :  { %v257_v62 = vmul.f32 %v650_v61, %v406_v60 }
 0x244   :  { %v261_v63 = vrot.slane %v257_v62, %v766_v10 }
 0x246   :  { %v262_v2 = vmul.f32 %v261_v63, %v246_v51 }
 0x248   :  { %v267_v3 = vadd.f32 %v408_v1, %v262_v2 }
 0x24a   :  { %v268_v4 = vmax.f32 %v267_v3, 0.0 }
 0x24c   :  { %566 = vmatmul.mubr.f32.vlgmr.msra.gmra.mrb[2].mxu0 %v268_v4 }
 0x31f   :  { %v352_v5 = vpop.f32.mrb[2].mxu0 }
 0x320   :  { %v359_v6 = vrot.slane %v352_v5, 4  ;;  %v567_v7 = vpop.f32.mrb[3].mxu0 }
 0x322   :  { %v360_v8 = vadd.f32 %v359_v6, %v352_v5 }
 0x324   :  { %v361_v9 = vrot.slane %v360_v8, 2 }
 0x326   :  { %v362_v11 = vadd.f32 %v361_v9, %v360_v8 }
 0x328   :  { %v363_v12 = vrot.slane %v362_v11, 1 }
 0x32a   :  { %v364_v13 = vadd.f32 %v363_v12, %v362_v11 }
 0x32c   :  { %v365_v14 = vmul.f32 0.125, %v364_v13 }
 0x32e   :  { %v366_v15 = vsub.f32 %v352_v5, %v365_v14 }
 0x330   :  { %v367_v16 = vmul.f32 %v366_v15, %v366_v15 }
 0x332   :  { %v368_v17 = vrot.slane %v367_v16, 4 }
 0x334   :  { %v369_v18 = vadd.f32 %v368_v17, %v367_v16 }
 0x336   :  { %v370_v19 = vrot.slane %v369_v18, 2 }
 0x338   :  { %v371_v20 = vadd.f32 %v370_v19, %v369_v18 }
 0x33a   :  { %v372_v21 = vrot.slane %v371_v20, 1 }
 0x33c   :  { %v373_v22 = vadd.f32 %v372_v21, %v371_v20 }
 0x33e   :  { %v374_v23 = vmul.f32 0.125, %v373_v22 }
 0x340   :  { %v375_v24 = vadd.f32 1e-05, %v374_v23 }
 0x342   :  { %651 = vrsqrt.f32 %v375_v24 }
 0x34c   :  { %v652_v26 = vpop.eup %651 }
 0x34d   :  { %v377_v27 = vmul.f32 %v652_v26, %v409_v25 }
 0x34f   :  { %v381_v28 = vrot.slane %v377_v27, %v766_v10 }
 0x351   :  { %v382_v30 = vmul.f32 %v381_v28, %v366_v15 }
 0x353   :  { %v387_v31 = vadd.f32 %v411_v29, %v382_v30 }
 0x355   :  { %v388_v32 = vmax.f32 %v387_v31, 0.0 }
 0x357   :  { %389 = vst [vmem:[#allocation5] sm:$0xff] %v388_v32 }
 0x358   :  { %686 = shalt.err (!%p683_p12)
}
 0x359   :  { %s687_s16 = scalar_lea.hbm %s808_s3, 128 }
 0x35a   :  { %p688_p13 = scmp.ne.s32.totalorder %s808_s3, %s687_s16  ;;  %p691_p0 = scmp.lt.u32.totalorder %s687_s16, %s808_s3 }
 0x35c   :  { %p693_p1 = pnand %p691_p0, %p688_p13 }
 0x35e   :  { %696 = shalt.err (!%p693_p1)
}
 0x35f   :  { %399 = dma.vmem_to_hbm [thread:$0]  %s397_s12, 128, %s808_s3, [#allocation4]  }
 0x360   :  { %699 = dma.done.wait [#allocation4], 128  }
 0x361   :  { %700 = vsyncadd [#allocation4], 4294967168 }
 0x362   :  { %403 = vsyncpa [#allocation3], 1 }
 0x363   :  { %404 = vsyncpa [#allocation4], 1 }

</bundles_post_ra>
